<compile_context>
chip_gen: v7x
topology: tpu7x:2x2x1
jax: 0.10.0
libtpu: 0.0.40
codegen_flags: <defaults>
</compile_context>

<pallas_src>
import math

import jax
import jax.numpy as jnp
from jax.experimental import pallas as pl
from jax.experimental.pallas import tpu as pltpu


def _make_scaled_dot_kernel(hidden_size: int, agent_nums: int):
    inv_scale = 1.0 / math.sqrt(hidden_size)
    A = agent_nums

    def kernel(q_ref, k_ref, v_ref, out_ref):
        # q_ref: (1, H)   k_ref: (A, H)   v_ref: (1, A)   out_ref: (1, A + 1)
        q = q_ref[...].astype(jnp.float32)
        k = k_ref[...].astype(jnp.float32)
        v = v_ref[...].astype(jnp.float32)

        # scores[0, a] = <key[a, :], query> / sqrt(H)
        # Contract on key's lane (hidden) axis directly -- no in-kernel transpose.
        scores = jax.lax.dot_general(
            q, k,
            dimension_numbers=(((1,), (1,)), ((), ())),
            preferred_element_type=jnp.float32,
        ) * inv_scale                                                   # (1, A)

        # softmax over the agent axis (dim=0 in the PyTorch code, lane axis here)
        m = jnp.max(scores, axis=-1, keepdims=True)
        e = jnp.exp(scores - m)
        w = e * pl.reciprocal(jnp.sum(e, axis=-1, keepdims=True), approx=False)

        # One lane-merged output row per batch element:
        #   lanes [0, A)  -> attention weights
        #   lane  A       -> global value (sum of weight * value)
        out_ref[:, :A] = w
        out_ref[:, A:] = jnp.sum(w * v, axis=-1, keepdims=True)         # (1, 1)

    return kernel


def global_attention_scaled_dot(query, key, value, hidden_size):
    """Batched GlobalAttention forward ('scaled dot').

    Batched:   query (B, H), key (B, A, H), value (B, A)
               -> (global_v (B,), attn_weight (B, A))
    Unbatched (module signature): query (H,), key (A, H), value (A,)
               -> (global_v scalar, attn_weight (A,))
    """
    unbatched = query.ndim == 1
    if unbatched:
        query, key, value = query[None], key[None], value[None]

    B, H = query.shape
    _, A, Hk = key.shape
    assert H == hidden_size and Hk == H and value.shape == (B, A)

    # Ship caller dtype; the kernel promotes to f32 internally.
    q3 = query.reshape(B, 1, H)
    k3 = key
    v3 = value.reshape(B, 1, A)

    out = pl.pallas_call(
        _make_scaled_dot_kernel(hidden_size, A),
        out_shape=jax.ShapeDtypeStruct((B, 1, A + 1), jnp.float32),
        grid=(B,),
        in_specs=[
            pl.BlockSpec((None, 1, H), lambda b: (b, 0, 0)),
            pl.BlockSpec((None, A, H), lambda b: (b, 0, 0)),
            pl.BlockSpec((None, 1, A), lambda b: (b, 0, 0)),
        ],
        out_specs=pl.BlockSpec((None, 1, A + 1), lambda b: (b, 0, 0)),
        compiler_params=pltpu.CompilerParams(
            dimension_semantics=("parallel",),
        ),
    )(q3, k3, v3)

    w = out[:, 0, :A]       # (B, A)
    gv = out[:, 0, A]       # (B,)

    if unbatched:
        return gv[0], w[0]
    return gv, w


def _reference(query, key, value, hidden_size):
    scores = (key @ query) / math.sqrt(hidden_size)
    w = jax.nn.softmax(scores, axis=0)
    return jnp.sum(w * value), w


if __name__ == "__main__":
    hidden_size = 32    # self.hidden_size in __init__
    agent_nums = 8
    batch = 16          # many GlobalAttention instances per pallas_call

    kq, kk, kv = jax.random.split(jax.random.PRNGKey(0), 3)
    query = jax.random.normal(kq, (batch, hidden_size), dtype=jnp.float32)
    key = jax.random.normal(kk, (batch, agent_nums, hidden_size), dtype=jnp.float32)
    value = jax.random.normal(kv, (batch, agent_nums), dtype=jnp.float32)

    # Batched path (one kernel launch for all instances).
    global_v, attn_weight = global_attention_scaled_dot(query, key, value, hidden_size)
    jax.block_until_ready((global_v, attn_weight))

    ref_v, ref_w = jax.vmap(_reference, in_axes=(0, 0, 0, None))(
        query, key, value, hidden_size)
    assert jnp.allclose(global_v, ref_v, atol=1e-5, rtol=1e-5)
    assert jnp.allclose(attn_weight, ref_w, atol=1e-5, rtol=1e-5)

    # Module-exact unbatched forward (single instance) through the same kernel.
    gv0, w0 = global_attention_scaled_dot(query[0], key[0], value[0], hidden_size)
    jax.block_until_ready((gv0, w0))
    assert jnp.allclose(gv0, ref_v[0], atol=1e-5, rtol=1e-5)
    assert jnp.allclose(w0, ref_w[0], atol=1e-5, rtol=1e-5)

    print("KERNEL_OK")
</pallas_src>

<mosaic_0001>
module attributes {stable_mosaic.version = 11 : i64} {
  func.func @kernel(%arg0: i32, %arg1: memref<1x1x32xf32, #tpu.memory_space<vmem>>, %arg2: memref<1x8x32xf32, #tpu.memory_space<vmem>>, %arg3: memref<1x1x8xf32, #tpu.memory_space<vmem>>, %arg4: memref<1x1x9xf32, #tpu.memory_space<vmem>>) attributes {dimension_semantics = [#tpu.dimension_semantics<parallel>], iteration_bounds = array<i64: 16>, scalar_prefetch = 0 : i64, scratch_operands = 0 : i64, tpu.core_type = #tpu.core_type<tc>, window_params = [{transform_indices = @transform_0, window_bounds = array<i64: 1, 1, 32>}, {transform_indices = @transform_1, window_bounds = array<i64: 1, 8, 32>}, {transform_indices = @transform_2, window_bounds = array<i64: 1, 1, 8>}, {transform_indices = @transform_3, window_bounds = array<i64: 1, 1, 9>}]} {
    %c0 = arith.constant 0 : index
    %c0_0 = arith.constant 0 : index
    %c0_1 = arith.constant 0 : index
    %0 = vector.load %arg1[%c0, %c0_0, %c0_1] : memref<1x1x32xf32, #tpu.memory_space<vmem>>, vector<1x1x32xf32>
    %1 = vector.shape_cast %0 : vector<1x1x32xf32> to vector<1x32xf32>
    %c0_2 = arith.constant 0 : index
    %c0_3 = arith.constant 0 : index
    %c0_4 = arith.constant 0 : index
    %2 = vector.load %arg2[%c0_2, %c0_3, %c0_4] : memref<1x8x32xf32, #tpu.memory_space<vmem>>, vector<1x8x32xf32>
    %3 = vector.shape_cast %2 : vector<1x8x32xf32> to vector<8x32xf32>
    %c0_5 = arith.constant 0 : index
    %c0_6 = arith.constant 0 : index
    %c0_7 = arith.constant 0 : index
    %4 = vector.load %arg3[%c0_5, %c0_6, %c0_7] : memref<1x1x8xf32, #tpu.memory_space<vmem>>, vector<1x1x8xf32>
    %5 = vector.shape_cast %4 : vector<1x1x8xf32> to vector<1x8xf32>
    %cst = arith.constant dense<0.000000e+00> : vector<1x8xf32>
    %6 = tpu.matmul %1, %3, %cst {dimension_numbers = #tpu.dot_dimension_numbers<[1], [1], [0], [0], [0, 0, 1, 0], [], []>} : vector<1x32xf32>, vector<8x32xf32>, vector<1x8xf32> -> vector<1x8xf32>
    %cst_8 = arith.constant 0.176776692 : f32
    %7 = vector.broadcast %cst_8 : f32 to vector<1x8xf32>
    %8 = arith.mulf %6, %7 : vector<1x8xf32>
    %cst_9 = arith.constant dense<0xFF800000> : vector<1xf32>
    %9 = vector.multi_reduction <maximumf>, %8, %cst_9 [1] : vector<1x8xf32> to vector<1xf32>
    %10 = vector.shape_cast %9 : vector<1xf32> to vector<1x1xf32>
    %11 = vector.broadcast %10 : vector<1x1xf32> to vector<1x8xf32>
    %12 = arith.subf %8, %11 : vector<1x8xf32>
    %13 = math.exp %12 : vector<1x8xf32>
    %cst_10 = arith.constant dense<0.000000e+00> : vector<1xf32>
    %14 = vector.multi_reduction <add>, %13, %cst_10 [1] : vector<1x8xf32> to vector<1xf32>
    %15 = vector.shape_cast %14 : vector<1xf32> to vector<1x1xf32>
    %16 = tpu.reciprocal %15 : vector<1x1xf32> -> vector<1x1xf32>
    %17 = vector.broadcast %16 : vector<1x1xf32> to vector<1x8xf32>
    %18 = arith.mulf %13, %17 : vector<1x8xf32>
    %c0_11 = arith.constant 0 : index
    %c0_12 = arith.constant 0 : index
    %c0_13 = arith.constant 0 : index
    %19 = vector.load %arg4[%c0_11, %c0_12, %c0_13] : memref<1x1x9xf32, #tpu.memory_space<vmem>>, vector<1x1x8xf32>
    %20 = vector.shape_cast %19 : vector<1x1x8xf32> to vector<1x8xf32>
    %21 = vector.shape_cast %18 : vector<1x8xf32> to vector<1x1x8xf32>
    tpu.vector_store %arg4[%c0_11, %c0_12, %c0_13], %21 {strides = array<i32>} : memref<1x1x9xf32, #tpu.memory_space<vmem>>, vector<1x1x8xf32>,
    %22 = arith.mulf %18, %5 : vector<1x8xf32>
    %cst_14 = arith.constant dense<0.000000e+00> : vector<1xf32>
    %23 = vector.multi_reduction <add>, %22, %cst_14 [1] : vector<1x8xf32> to vector<1xf32>
    %24 = vector.shape_cast %23 : vector<1xf32> to vector<1x1xf32>
    %c0_15 = arith.constant 0 : index
    %c0_16 = arith.constant 0 : index
    %c8 = arith.constant 8 : index
    %25 = vector.load %arg4[%c0_15, %c0_16, %c8] : memref<1x1x9xf32, #tpu.memory_space<vmem>>, vector<1x1x1xf32>
    %26 = vector.shape_cast %25 : vector<1x1x1xf32> to vector<1x1xf32>
    %27 = vector.shape_cast %24 : vector<1x1xf32> to vector<1x1x1xf32>
    tpu.vector_store %arg4[%c0_15, %c0_16, %c8], %27 {strides = array<i32>} : memref<1x1x9xf32, #tpu.memory_space<vmem>>, vector<1x1x1xf32>,
    return
  }
  func.func @transform_0(%arg0: i32) -> (i32, i32, i32) {
    %c0_i32 = arith.constant 0 : i32
    %c0_i32_0 = arith.constant 0 : i32
    %c0_i32_1 = arith.constant 0 : i32
    return %arg0, %c0_i32, %c0_i32_0 : i32, i32, i32
  }
  func.func @transform_1(%arg0: i32) -> (i32, i32, i32) {
    %c0_i32 = arith.constant 0 : i32
    %c0_i32_0 = arith.constant 0 : i32
    %c0_i32_1 = arith.constant 0 : i32
    return %arg0, %c0_i32, %c0_i32_0 : i32, i32, i32
  }
  func.func @transform_2(%arg0: i32) -> (i32, i32, i32) {
    %c0_i32 = arith.constant 0 : i32
    %c0_i32_0 = arith.constant 0 : i32
    %c0_i32_1 = arith.constant 0 : i32
    return %arg0, %c0_i32, %c0_i32_0 : i32, i32, i32
  }
  func.func @transform_3(%arg0: i32) -> (i32, i32, i32) {
    %c0_i32 = arith.constant 0 : i32
    %c0_i32_0 = arith.constant 0 : i32
    %c0_i32_1 = arith.constant 0 : i32
    return %arg0, %c0_i32, %c0_i32_0 : i32, i32, i32
  }
}

</mosaic_0001>

<bundles_post_ra>
// kernel: tpu_custom_call.1
= control target key start
LH: loop header
LB: loop body
LE: loop exit
PB: predicated region body
PF: predicated region fallthrough
CT: control target
= control target key end

     0   :  { %8 = vsyncpa [#allocation3], 0  ;;  %s658_s0 = inlined_call_operand.vmem [shape: f32[16,1,32], index: 0, kind: input, shape index: {}]   ;;  %s659_s1 = inlined_call_operand.hbm [shape: f32[16,8,32], index: 1, kind: input, shape index: {}]   ;;  %s660_s2 = inlined_call_operand.vmem [shape: f32[16,1,8], index: 2, kind: input, shape index: {}]   ;;  %s661_s3 = inlined_call_operand.vmem [shape: f32[16,1,9], index: 3, kind: output, shape index: {}]  }
   0x1   :  { %10 = vsyncpa [#allocation3 + $0x1], 0  ;;  %s541_s12 = smov 0   ;;  %s543_s13 = smov 0  }
   0x2   :  { %s545_s14 = smov 0   ;;  %s547_s15 = smov 0  }
   0x3 LB: > { %s560_s16 = sadd.s32 4294967295, %s516_s15   ;;  %s563_s17 = sadd.s32 1, %s516_s15   ;;  %s516_s15 = sphi %s547_s15, %s669_s15   ;;  %s512_s14 = sphi %s545_s14, %s668_s14   ;;  %s508_s13 = sphi %s543_s13, %s667_s13   ;;  %s504_s12 = sphi %s541_s12, %s666_s12  }
   0x4   : > { %s46_s18 = ssub.s32 %s516_s15, %s563_s17  ;;  %s49_s19 = sadd.s32 1, %s512_s14 }
   0x5   : > { %p47_p0 = scmp.eq.s32.totalorder %s46_s18, 0  ;;  %p56_p1 = scmp.ne.s32.totalorder %s512_s14, %s508_s13 }
   0x6   : > { %p57_p2 = scmp.eq.s32.totalorder %s516_s15, 0  ;;  %p62_p3 = scmp.ne.s32.totalorder %s508_s13, %s504_s12 }
   0x7   : > { %s573_s20 = scalar_select %p47_p0, %s512_s14, %s49_s19  }
   0x8   : > { %p58_p4 = por %p57_p2, %p56_p1  ;;  %p63_p5 = scmp.eq.s32.totalorder %s560_s16, 0 }
   0x9   : > { %p413_p6 = scmp.lt.s32.totalorder %s516_s15, 16  ;;  %s144_s22 = sand.u32 1, %s512_s14  }
   0xa   : > { %p577_p7 = por %p63_p5, %p62_p3  ;;  %s392_s23 = sshll.u32 %s144_s22, 3 }
   0xb   : > { %s393_s24 = sshll.u32 %s516_s15, 7  ;;  %s148_s28 = scalar_lea.vmem [#allocation2], %s392_s23 }
   0xc   : > { %s586_s27 = scalar_lea.hbm %s659_s1, %s393_s24  ;;  %s155_s29 = sshll.u32 %s148_s28, 4  ;;  %s588_s29 = int_to_ptr.vmem [resolvable:$true] %s155_s29 }
   0xd   : > { %p590_p8 = pnand %p413_p6, %p58_p4  ;;  %s145_s4 = scalar_lea.sflag [#allocation3], %s144_s22 }
   0xe   : > { %s452_s5 = scalar_lea.hbm %s586_s27, 128  ;;  %s457_s8 = scalar_lea.hbm %s659_s1, 2048 }
   0xf   : > { %p453_p11 = scmp.ne.s32.totalorder %s586_s27, %s452_s5  ;;  %p454_p12 = pneg %p590_p8 }
  0x10   : > { %p458_p1 = scmp.lt.u32.totalorder %s586_s27, %s659_s1  ;;  %p459_p2 = scmp.lt.u32.totalorder %s457_s8, %s452_s5 }
  0x11   : > { %p455_p13 = pnand %p454_p12, %p453_p11  ;;  %p461_p4 = scmp.lt.u32.totalorder %s452_s5, %s586_s27 }
  0x12   : > { %p460_p3 = por %p459_p2, %p458_p1 }
  0x13   : > { %p456_p0 = pneg %p455_p13 }
  0x14   : > { %p462_p5 = por %p461_p4, %p460_p3 }
  0x16   : > { %p463_p6 = pnand %p462_p5, %p456_p0 }
  0x18   : > { %466 = shalt.err (!%p463_p6)
}
  0x19   : > { %s467_s11 = scalar_lea.vmem %s588_s29, 128  ;;  %s518_s12 = smov [#allocation2]  }
  0x1a   : > { %p468_p11 = scmp.ne.s32.totalorder %s588_s29, %s467_s11  ;;  %s472_s18 = sshll.u32 %s518_s12, 4  ;;  %s473_s18 = int_to_ptr.vmem [resolvable:$false] %s472_s18 }
  0x1b   : > { %s474_s19 = scalar_lea.vmem %s473_s18, 256  ;;  %p475_p10 = scmp.lt.s32.totalorder %s588_s29, %s473_s18 }
  0x1c   : > { %p470_p13 = pnand %p468_p11, %p454_p12  ;;  %p476_p1 = scmp.lt.s32.totalorder %s474_s19, %s467_s11 }
  0x1e   : > { %p471_p9 = pneg %p470_p13  ;;  %p477_p2 = por %p476_p1, %p475_p10 }
  0x20   : > { %p478_p3 = pnand %p477_p2, %p471_p9 }
  0x22   : > { %481 = shalt.err (!%p478_p3)
}
  0x23   : > { %412 = dma.hbm_to_vmem [thread:$0]  (!%p590_p8), %s586_s27, 128, %s588_s29, %s145_s4  }
  0x24   : > { %p664_p0 = scmp.lt.s32.totalorder %s516_s15, 17  ;;  %p665_p4 = scmp.ge.s32.totalorder %s516_s15, 1 }
  0x26   : > { %p167_p12 = pnand %p665_p4, %p664_p0 }
  0x27   : > { %s172_s22 = sand.u32 (!%p167_p12), 1, %s508_s13  }
  0x28   : > { %170 = sbr.rel (%p167_p12) target bundleno = 727 (0x2d7), region = 32  ;;  %s395_s23 = sshll.u32 (!%p167_p12), %s172_s22, 3 }
  0x29   : > { %s173_s24 = scalar_lea.sflag (!%p167_p12), [#allocation3], %s172_s22  ;;  %s176_s25 = scalar_lea.vmem (!%p167_p12), [#allocation2], %s395_s23 }
  0x2f   : > { %499 = dma.done.wait (%p577_p7), %s173_s24, 128  }
  0x30   : > { %501 = vsyncadd (%p577_p7), %s173_s24, 4294967168  ;;  %p203_p9 = scmp.lt.s32.totalorder %s560_s16, 15  ;;  %v519_v0 = vmov 0.0   ;;  %vm520_vm0 = vmmov 0   ;;  %vm215_vm1 = vcmask 261120   ;;  %v213_v1 = vld [vmem:[%s176_s25] sm:$0xff] }
  0x31   : > { %402 = vmatprep.subr.mxu0 %v519_v0  ;;  %404 = vmatprep.mubr.msk.f32.mxu0 %vm520_vm0, %v519_v0  ;;  %vm293_vm2 = vcmask 57344   ;;  %vm310_vm3 = vcmask 65600  }
  0x32   : > { %s671_s16 = smov (!%p203_p9, %s560_s16), 15  ;;  %403 = vmatpush3.xpose.msk.msra.mxu0 %vm215_vm1, %v213_v1 }
  0x33   : > { %s205_s27 = scalar_lea.vmem %s658_s0, %s671_s16  ;;  %s208_s29 = scalar_lea.vmem %s660_s2, %s671_s16 }
  0x34   : > { %v212_v2 = vld [vmem:[%s205_s27] sm:$0x1]  ;;  %s211_s5 = scalar_lea.vmem %s661_s3, %s671_s16 }
  0x35   : > { %405 = vmatmul.mubr.msk.f32.vlgmr.msra.gmra.mrb[0].mxu0 %vm215_vm1, %v212_v2  ;;  %v214_v14 = vld [vmem:[%s208_s29] sm:$0x1] }
 0x108   : > { %v288_v3 = vpop.f32.mrb[0].mxu0 }
 0x109   : > { %v292_v4 = vmul.f32 0.17677669, %v288_v3  ;;  %v406_v5 = vpop.f32.mrb[1].mxu0 }
 0x10b   : > { %v294_v6 = vsel %vm293_vm2, %v292_v4, -inf }
 0x10c   : > { %295 = vmax.xlane.f32.xlu0 %v294_v6 }
 0x199   : > { %v296_v7 = vpop.xlane.xlu0 %295 }
 0x19a   : > { %v297_v8 = vsub.f32 %v292_v4, %v296_v7 }
 0x19c   : > { %v298_v9 = vmul.f32 1.442695, %v297_v8 }
 0x19e   : > { %448 = vpow2.f32 %v298_v9 }
 0x1a8   : > { %v449_v10 = vpop.eup %448 }
 0x1a9   : > { %v300_v11 = vsel %vm293_vm2, %v449_v10, 0.0 }
 0x1aa   : > { %301 = vadd.xlane.f32.xlu0 %v300_v11 }
 0x237   : > { %v302_v12 = vpop.xlane.xlu0 %301 }
 0x238   : > { %450 = vrcp.f32 %v302_v12 }
 0x242   : > { %v451_v13 = vpop.eup %450 }
 0x243   : > { %v304_v15 = vmul.f32 %v451_v13, %v449_v10 }
 0x245   : > { %v306_v16 = vmul.f32 %v304_v15, %v214_v14  ;;  %305 = vst.msk [vmem:[%s211_s5] sm:$0x1] %vm293_vm2, %v304_v15 }
 0x247   : > { %v307_v17 = vsel %vm293_vm2, %v306_v16, 0.0 }
 0x248   : > { %308 = vadd.xlane.f32.xlu1 %v307_v17 }
 0x2d5   : > { %v309_v18 = vpop.xlane.xlu1 %308 }
 0x2d6   : > { %311 = vst.msk [vmem:[%s211_s5] sm:$0x1] %vm310_vm3, %v309_v18 }
 0x2d7 PF: > { %p13_p7 = scmp.ge.s32.totalorder %s563_s17, 18   ;;  %s666_s12 = smov %s508_s13 }
 0x2d8   : > { %s667_s13 = smov %s512_s14  ;;  %s668_s14 = smov %s573_s20 }
 0x2d9   : > { %s669_s15 = smov %s563_s17  ;;  %15 = sbr.rel (!%p13_p7) target bundleno = 3 (0x3), region = 78 }
 0x2e0   :  { %329 = vsyncpa [#allocation3], 1 }
 0x2e1   :  { %331 = vsyncpa [#allocation3 + $0x1], 1 }

</bundles_post_ra>
